<compile_context>
chip_gen: v5e
topology: v5e:2x2
jax: 0.10.0
libtpu: 0.0.40
codegen_flags: <defaults>
</compile_context>

<pallas_src>
import jax
import jax.numpy as jnp
from jax.experimental import pallas as pl
from jax.experimental.pallas import tpu as pltpu


def _mlp_kernel(x_ref,
                w1_ref, b1_ref,
                w2_ref, b2_ref,
                w3_ref, b3_ref,
                w4_ref, b4_ref,
                o_ref):
    # x block arrives in its natural (tm, 8) row-major layout; transpose once
    # so the batch sits on the 128-lane axis and every subsequent VPU op,
    # matmul output and the final store are lane-dense.
    xt = x_ref[...].T                                              # (8, tm)

    # net1: Linear(8 -> 16) + ReLU
    h = jnp.dot(w1_ref[...], xt, preferred_element_type=jnp.float32) + b1_ref[...]
    h = jnp.maximum(h, 0.0)                                        # (16, tm)

    # net2: Linear(16 -> 32) + ReLU
    h = jnp.dot(w2_ref[...], h, preferred_element_type=jnp.float32) + b2_ref[...]
    h = jnp.maximum(h, 0.0)                                        # (32, tm)

    # net3: Linear(32 -> 64) (no activation)
    h = jnp.dot(w3_ref[...], h, preferred_element_type=jnp.float32) + b3_ref[...]

    # net4: ReLU then Linear(64 -> 8)
    h = jnp.maximum(h, 0.0)                                        # (64, tm)
    out = jnp.dot(w4_ref[...], h, preferred_element_type=jnp.float32) + b4_ref[...]

    o_ref[...] = out.astype(o_ref.dtype)                           # (8, tm), lane-dense


def _choose_tile(batch, tile_m):
    """Pick a batch tile (batch lives on the lane axis of the output)."""
    LANE = 128
    if batch <= 2 * LANE:
        # Single block; block dim == full array dim satisfies the (8,128) rule.
        return batch
    # 128-aligned tile, capped at tile_m, sized for >= 2 grid steps
    # (double-buffering + both v7x TensorCores).
    tm = min(tile_m, pl.cdiv(batch, 2 * LANE) * LANE)
    nblk = pl.cdiv(batch, tm)
    if nblk > 2 and nblk % 2 == 1:
        # Re-split so the grid is even (balanced across v7x's two cores).
        tm = pl.cdiv(pl.cdiv(batch, nblk + 1), LANE) * LANE
    return tm


def mlp_forward(x, params, *, tile_m=1024):
    """x: (B, 8) float32. params: PyTorch-layout (out, in) weights, (out, 1) biases."""
    w1, b1 = params["w1"], params["b1"]
    w2, b2 = params["w2"], params["b2"]
    w3, b3 = params["w3"], params["b3"]
    w4, b4 = params["w4"], params["b4"]

    B, d_in = x.shape
    d_out = w4.shape[0]

    tm = _choose_tile(B, tile_m)
    grid = (pl.cdiv(B, tm),)   # no pad: ragged last block is clipped by Pallas

    # Weights / biases: full-array blocks, constant block index -> DMA'd once,
    # resident in VMEM across all batch tiles.
    def resident(a):
        return pl.BlockSpec(a.shape, lambda i: (0, 0))

    out_t = pl.pallas_call(
        _mlp_kernel,
        out_shape=jax.ShapeDtypeStruct((d_out, B), x.dtype),   # lane-dense (8, B)
        grid=grid,
        in_specs=[
            pl.BlockSpec((tm, d_in), lambda i: (i, 0)),
            resident(w1), resident(b1),
            resident(w2), resident(b2),
            resident(w3), resident(b3),
            resident(w4), resident(b4),
        ],
        out_specs=pl.BlockSpec((d_out, tm), lambda i: (0, i)),
        compiler_params=pltpu.CompilerParams(
            dimension_semantics=("parallel",)),
    )(x, w1, b1, w2, b2, w3, b3, w4, b4)

    # Restore the PyTorch (batch, features) return layout.
    return out_t.T


def init_params(key):
    """Deterministic init mimicking nn.Linear default: U(-1/sqrt(fan_in), +).

    Weights kept in PyTorch (out, in) layout; biases as (out, 1) columns so the
    kernel's transposed formulation can add them with a lane broadcast.
    """
    dims = [(8, 16), (16, 32), (32, 64), (64, 8)]
    params = {}
    for idx, (fan_in, fan_out) in enumerate(dims, start=1):
        key, kw, kb = jax.random.split(key, 3)
        bound = 1.0 / jnp.sqrt(jnp.float32(fan_in))
        params[f"w{idx}"] = jax.random.uniform(
            kw, (fan_out, fan_in), jnp.float32, minval=-bound, maxval=bound)
        params[f"b{idx}"] = jax.random.uniform(
            kb, (fan_out, 1), jnp.float32, minval=-bound, maxval=bound)
    return params


def reference_forward(x, p):
    h = jnp.maximum(x @ p["w1"].T + p["b1"].T, 0.0)
    h = jnp.maximum(h @ p["w2"].T + p["b2"].T, 0.0)
    h = h @ p["w3"].T + p["b3"].T
    h = jnp.maximum(h, 0.0)
    return h @ p["w4"].T + p["b4"].T


if __name__ == "__main__":
    key = jax.random.PRNGKey(0)
    kx, kp, kx2, kx3 = jax.random.split(key, 4)
    params = init_params(kp)

    # Matches Model.get_input(): torch.rand(8, 8) -> uniform [0, 1), shape (8, 8).
    x = jax.random.uniform(kx, (8, 8), jnp.float32)
    out = jax.block_until_ready(mlp_forward(x, params))
    ref = reference_forward(x, params)
    assert out.shape == (8, 8)
    assert jnp.allclose(out, ref, atol=1e-4, rtol=1e-4)

    # Multi-step grid: tm=512, grid=(2,) -- even split for v7x, pipelined.
    x_big = jax.random.uniform(kx2, (1024, 8), jnp.float32)
    out_big = jax.block_until_ready(mlp_forward(x_big, params))
    assert out_big.shape == (1024, 8)
    assert jnp.allclose(out_big, reference_forward(x_big, params), atol=1e-4, rtol=1e-4)

    # Ragged batch: no pad/slice -- Pallas clips the last block (edge writes masked).
    x_rag = jax.random.uniform(kx3, (1000, 8), jnp.float32)
    out_rag = jax.block_until_ready(mlp_forward(x_rag, params))
    assert out_rag.shape == (1000, 8)
    assert jnp.allclose(out_rag, reference_forward(x_rag, params), atol=1e-4, rtol=1e-4)

    print("KERNEL_OK")
</pallas_src>

<mosaic_0001>
module attributes {stable_mosaic.version = 11 : i64} {
  func.func @_mlp_kernel(%arg0: i32, %arg1: memref<8x8xf32, #tpu.memory_space<vmem>>, %arg2: memref<16x8xf32, #tpu.memory_space<vmem>>, %arg3: memref<16x1xf32, #tpu.memory_space<vmem>>, %arg4: memref<32x16xf32, #tpu.memory_space<vmem>>, %arg5: memref<32x1xf32, #tpu.memory_space<vmem>>, %arg6: memref<64x32xf32, #tpu.memory_space<vmem>>, %arg7: memref<64x1xf32, #tpu.memory_space<vmem>>, %arg8: memref<8x64xf32, #tpu.memory_space<vmem>>, %arg9: memref<8x1xf32, #tpu.memory_space<vmem>>, %arg10: memref<8x8xf32, #tpu.memory_space<vmem>>) attributes {dimension_semantics = [#tpu.dimension_semantics<parallel>], iteration_bounds = array<i64: 1>, scalar_prefetch = 0 : i64, scratch_operands = 0 : i64, tpu.core_type = #tpu.core_type<tc>, window_params = [{transform_indices = @transform_0, window_bounds = array<i64: 8, 8>}, {pipeline_mode = #tpu.pipeline_mode<synchronous>, transform_indices = @transform_1, window_bounds = array<i64: 16, 8>}, {pipeline_mode = #tpu.pipeline_mode<synchronous>, transform_indices = @transform_2, window_bounds = array<i64: 16, 1>}, {pipeline_mode = #tpu.pipeline_mode<synchronous>, transform_indices = @transform_3, window_bounds = array<i64: 32, 16>}, {pipeline_mode = #tpu.pipeline_mode<synchronous>, transform_indices = @transform_4, window_bounds = array<i64: 32, 1>}, {pipeline_mode = #tpu.pipeline_mode<synchronous>, transform_indices = @transform_5, window_bounds = array<i64: 64, 32>}, {pipeline_mode = #tpu.pipeline_mode<synchronous>, transform_indices = @transform_6, window_bounds = array<i64: 64, 1>}, {pipeline_mode = #tpu.pipeline_mode<synchronous>, transform_indices = @transform_7, window_bounds = array<i64: 8, 64>}, {pipeline_mode = #tpu.pipeline_mode<synchronous>, transform_indices = @transform_8, window_bounds = array<i64: 8, 1>}, {transform_indices = @transform_9, window_bounds = array<i64: 8, 8>}]} {
    %c0 = arith.constant 0 : index
    %c0_0 = arith.constant 0 : index
    %0 = vector.load %arg1[%c0, %c0_0] : memref<8x8xf32, #tpu.memory_space<vmem>>, vector<8x8xf32>
    %1 = tpu.transpose %0, [1, 0] : vector<8x8xf32> -> vector<8x8xf32>
    %c0_1 = arith.constant 0 : index
    %c0_2 = arith.constant 0 : index
    %2 = vector.load %arg2[%c0_1, %c0_2] : memref<16x8xf32, #tpu.memory_space<vmem>>, vector<16x8xf32>
    %cst = arith.constant dense<0.000000e+00> : vector<16x8xf32>
    %3 = tpu.matmul %2, %1, %cst {dimension_numbers = #tpu.dot_dimension_numbers<[1], [0], [0], [1], [0, 0, 1, 1], [], []>} : vector<16x8xf32>, vector<8x8xf32>, vector<16x8xf32> -> vector<16x8xf32>
    %c0_3 = arith.constant 0 : index
    %c0_4 = arith.constant 0 : index
    %4 = vector.load %arg3[%c0_3, %c0_4] : memref<16x1xf32, #tpu.memory_space<vmem>>, vector<16x1xf32>
    %5 = vector.broadcast %4 : vector<16x1xf32> to vector<16x8xf32>
    %6 = arith.addf %3, %5 : vector<16x8xf32>
    %cst_5 = arith.constant 0.000000e+00 : f32
    %7 = vector.broadcast %cst_5 : f32 to vector<16x8xf32>
    %8 = arith.maximumf %6, %7 : vector<16x8xf32>
    %c0_6 = arith.constant 0 : index
    %c0_7 = arith.constant 0 : index
    %9 = vector.load %arg4[%c0_6, %c0_7] : memref<32x16xf32, #tpu.memory_space<vmem>>, vector<32x16xf32>
    %cst_8 = arith.constant dense<0.000000e+00> : vector<32x8xf32>
    %10 = tpu.matmul %9, %8, %cst_8 {dimension_numbers = #tpu.dot_dimension_numbers<[1], [0], [0], [1], [0, 0, 1, 1], [], []>} : vector<32x16xf32>, vector<16x8xf32>, vector<32x8xf32> -> vector<32x8xf32>
    %c0_9 = arith.constant 0 : index
    %c0_10 = arith.constant 0 : index
    %11 = vector.load %arg5[%c0_9, %c0_10] : memref<32x1xf32, #tpu.memory_space<vmem>>, vector<32x1xf32>
    %12 = vector.broadcast %11 : vector<32x1xf32> to vector<32x8xf32>
    %13 = arith.addf %10, %12 : vector<32x8xf32>
    %cst_11 = arith.constant 0.000000e+00 : f32
    %14 = vector.broadcast %cst_11 : f32 to vector<32x8xf32>
    %15 = arith.maximumf %13, %14 : vector<32x8xf32>
    %c0_12 = arith.constant 0 : index
    %c0_13 = arith.constant 0 : index
    %16 = vector.load %arg6[%c0_12, %c0_13] : memref<64x32xf32, #tpu.memory_space<vmem>>, vector<64x32xf32>
    %cst_14 = arith.constant dense<0.000000e+00> : vector<64x8xf32>
    %17 = tpu.matmul %16, %15, %cst_14 {dimension_numbers = #tpu.dot_dimension_numbers<[1], [0], [0], [1], [0, 0, 1, 1], [], []>} : vector<64x32xf32>, vector<32x8xf32>, vector<64x8xf32> -> vector<64x8xf32>
    %c0_15 = arith.constant 0 : index
    %c0_16 = arith.constant 0 : index
    %18 = vector.load %arg7[%c0_15, %c0_16] : memref<64x1xf32, #tpu.memory_space<vmem>>, vector<64x1xf32>
    %19 = vector.broadcast %18 : vector<64x1xf32> to vector<64x8xf32>
    %20 = arith.addf %17, %19 : vector<64x8xf32>
    %cst_17 = arith.constant 0.000000e+00 : f32
    %21 = vector.broadcast %cst_17 : f32 to vector<64x8xf32>
    %22 = arith.maximumf %20, %21 : vector<64x8xf32>
    %c0_18 = arith.constant 0 : index
    %c0_19 = arith.constant 0 : index
    %23 = vector.load %arg8[%c0_18, %c0_19] : memref<8x64xf32, #tpu.memory_space<vmem>>, vector<8x64xf32>
    %cst_20 = arith.constant dense<0.000000e+00> : vector<8x8xf32>
    %24 = tpu.matmul %23, %22, %cst_20 {dimension_numbers = #tpu.dot_dimension_numbers<[1], [0], [0], [1], [0, 0, 1, 1], [], []>} : vector<8x64xf32>, vector<64x8xf32>, vector<8x8xf32> -> vector<8x8xf32>
    %c0_21 = arith.constant 0 : index
    %c0_22 = arith.constant 0 : index
    %25 = vector.load %arg9[%c0_21, %c0_22] : memref<8x1xf32, #tpu.memory_space<vmem>>, vector<8x1xf32>
    %26 = vector.broadcast %25 : vector<8x1xf32> to vector<8x8xf32>
    %27 = arith.addf %24, %26 : vector<8x8xf32>
    %c0_23 = arith.constant 0 : index
    %c0_24 = arith.constant 0 : index
    %28 = vector.load %arg10[%c0_23, %c0_24] : memref<8x8xf32, #tpu.memory_space<vmem>>, vector<8x8xf32>
    tpu.vector_store %arg10[%c0_23, %c0_24], %27 {strides = array<i32>} : memref<8x8xf32, #tpu.memory_space<vmem>>, vector<8x8xf32>,
    return
  }
  func.func @transform_0(%arg0: i32) -> (i32, i32) {
    %c0_i32 = arith.constant 0 : i32
    %c0_i32_0 = arith.constant 0 : i32
    return %arg0, %c0_i32 : i32, i32
  }
  func.func @transform_1(%arg0: i32) -> (i32, i32) {
    %c0_i32 = arith.constant 0 : i32
    %c0_i32_0 = arith.constant 0 : i32
    %c0_i32_1 = arith.constant 0 : i32
    return %c0_i32, %c0_i32_0 : i32, i32
  }
  func.func @transform_2(%arg0: i32) -> (i32, i32) {
    %c0_i32 = arith.constant 0 : i32
    %c0_i32_0 = arith.constant 0 : i32
    %c0_i32_1 = arith.constant 0 : i32
    return %c0_i32, %c0_i32_0 : i32, i32
  }
  func.func @transform_3(%arg0: i32) -> (i32, i32) {
    %c0_i32 = arith.constant 0 : i32
    %c0_i32_0 = arith.constant 0 : i32
    %c0_i32_1 = arith.constant 0 : i32
    return %c0_i32, %c0_i32_0 : i32, i32
  }
  func.func @transform_4(%arg0: i32) -> (i32, i32) {
    %c0_i32 = arith.constant 0 : i32
    %c0_i32_0 = arith.constant 0 : i32
    %c0_i32_1 = arith.constant 0 : i32
    return %c0_i32, %c0_i32_0 : i32, i32
  }
  func.func @transform_5(%arg0: i32) -> (i32, i32) {
    %c0_i32 = arith.constant 0 : i32
    %c0_i32_0 = arith.constant 0 : i32
    %c0_i32_1 = arith.constant 0 : i32
    return %c0_i32, %c0_i32_0 : i32, i32
  }
  func.func @transform_6(%arg0: i32) -> (i32, i32) {
    %c0_i32 = arith.constant 0 : i32
    %c0_i32_0 = arith.constant 0 : i32
    %c0_i32_1 = arith.constant 0 : i32
    return %c0_i32, %c0_i32_0 : i32, i32
  }
  func.func @transform_7(%arg0: i32) -> (i32, i32) {
    %c0_i32 = arith.constant 0 : i32
    %c0_i32_0 = arith.constant 0 : i32
    %c0_i32_1 = arith.constant 0 : i32
    return %c0_i32, %c0_i32_0 : i32, i32
  }
  func.func @transform_8(%arg0: i32) -> (i32, i32) {
    %c0_i32 = arith.constant 0 : i32
    %c0_i32_0 = arith.constant 0 : i32
    %c0_i32_1 = arith.constant 0 : i32
    return %c0_i32, %c0_i32_0 : i32, i32
  }
  func.func @transform_9(%arg0: i32) -> (i32, i32) {
    %c0_i32 = arith.constant 0 : i32
    %c0_i32_0 = arith.constant 0 : i32
    return %c0_i32, %arg0 : i32, i32
  }
}

</mosaic_0001>

<bundles_post_ra>
// kernel: tpu_custom_call.1
= control target key start
LH: loop header
LB: loop body
LE: loop exit
PB: predicated region body
PF: predicated region fallthrough
CT: control target
= control target key end

     0   :  { %vm48_vm0 = vcmask 64512   ;;  %v390_v2 = vmov 0   ;;  %s550_s0 = inlined_call_operand.vmem [shape: f32[8,8], index: 0, kind: input, shape index: {}]   ;;  %s551_s1 = inlined_call_operand.vmem [shape: f32[16,8], index: 1, kind: input, shape index: {}]   ;;  %s552_s2 = inlined_call_operand.vmem [shape: f32[16,1], index: 2, kind: input, shape index: {}]   ;;  %s553_s3 = inlined_call_operand.vmem [shape: f32[32,16], index: 3, kind: input, shape index: {}]   ;;  %s554_s4 = inlined_call_operand.vmem [shape: f32[32,1], index: 4, kind: input, shape index: {}]   ;;  %s555_s5 = inlined_call_operand.vmem [shape: f32[64,32], index: 5, kind: input, shape index: {}]   ;;  %s556_s6 = inlined_call_operand.vmem [shape: f32[64,1], index: 6, kind: input, shape index: {}]   ;;  %s557_s7 = inlined_call_operand.vmem [shape: f32[8,64], index: 7, kind: input, shape index: {}]   ;;  %s558_s8 = inlined_call_operand.vmem [shape: f32[8,1], index: 8, kind: input, shape index: {}]   ;;  %s559_s9 = inlined_call_operand.hbm [shape: f32[8,8], index: 9, kind: output, shape index: {}]  }
   0x1   :  { %v33_v0 = vld [vmem:[%s550_s0] sm:$0xff]  ;;  %v37_v1 = vld [vmem:[%s552_s2 + $0x8] sm:$0xff]  ;;  %361 = vset.pattern.permute.xlu0 %v390_v2  ;;  %362 = vset.pattern.permute.xlu1 %v390_v2 }
   0x2   :  { %335 = vmatpush.xpose.msk.msra.mxu0 %vm48_vm0, %v33_v0  ;;  %v34_v3 = vld [vmem:[%s551_s1] sm:$0xff]  ;;  %45 = vperm.xlu0 %361, %v37_v1  }
   0x3   :  { %14 = vsyncpa [#allocation3], 0  ;;  %363 = vset.pattern.permute.xlu2 %v390_v2  ;;  %v36_v4 = vld [vmem:[%s552_s2] sm:$0xff]  ;;  %v35_v5 = vld [vmem:[%s551_s1 + $0x8] sm:$0xff]  ;;  %vm111_vm1 = vcmask 130048   ;;  %vm213_vm2 = vcmask 261120  }
   0x4   :  { %v172_v6 = vld [vmem:[%s556_s6 + $0x38] sm:$0xff]  ;;  %v169_v7 = vld [vmem:[%s556_s6 + $0x20] sm:$0xff]  ;;  %v166_v8 = vld [vmem:[%s556_s6 + $0x8] sm:$0xff]  ;;  %vm294_vm3 = vcmask 523264   ;;  %s391_s17 = smov [#allocation2]   ;;  %s326_s21 = sshll.u32 %s559_s9, 4  ;;  %s327_s21 = int_to_ptr.hbm [resolvable:$true] %s326_s21 }
   0x5   :  { %336 = vmatmul.msk.f32.vlgmr.msra.gmra.mxu0 %vm48_vm0, %v34_v3  ;;  %v90_v9 = vld [vmem:[%s554_s4 + $0x18] sm:$0xff]  ;;  %v89_v10 = vld [vmem:[%s554_s4 + $0x10] sm:$0xff]  ;;  %v88_v17 = vld [vmem:[%s554_s4 + $0x8] sm:$0xff]  ;;  %s324_s18 = sshll.u32 %s391_s17, 4  ;;  %s325_s18 = int_to_ptr.vmem [resolvable:$true] %s324_s18 }
   0x6   :  { %108 = vperm.xlu1 %362, %v90_v9   ;;  %v171_v11 = vld [vmem:[%s556_s6 + $0x30] sm:$0xff]  ;;  %v168_v14 = vld [vmem:[%s556_s6 + $0x18] sm:$0xff]  ;;  %98 = vperm.xlu2 %363, %v88_v17   ;;  %v165_v20 = vld [vmem:[%s556_s6] sm:$0xff] }
   0x7   :  { %v83_v23 = vld [vmem:[%s553_s3] sm:$0xff]  ;;  %v84_v25 = vld [vmem:[%s553_s3 + $0x8] sm:$0xff]  ;;  %v85_v27 = vld [vmem:[%s553_s3 + $0x10] sm:$0xff] }
   0x8   :  { %v87_v24 = vld [vmem:[%s554_s4] sm:$0xff]  ;;  %v170_v26 = vld [vmem:[%s556_s6 + $0x28] sm:$0xff]  ;;  %v167_v28 = vld [vmem:[%s556_s6 + $0x10] sm:$0xff] }
   0x9   :  { %v86_v29 = vld [vmem:[%s553_s3 + $0x18] sm:$0xff]  ;;  %v288_v30 = vld [vmem:[%s558_s8] sm:$0xff]  ;;  %v159_v48 = vld [vmem:[%s555_s5 + $0x10] sm:$0xff] }
   0xa   :  { %40 = vperm.xlu0 %361, %v36_v4   ;;  %v157_v47 = vld [vmem:[%s555_s5] sm:$0xff]  ;;  %v163_v49 = vld [vmem:[%s555_s5 + $0x30] sm:$0xff]  ;;  %v158_v50 = vld [vmem:[%s555_s5 + $0x8] sm:$0xff] }
   0xb   :  { %v160_v51 = vld [vmem:[%s555_s5 + $0x18] sm:$0xff]  ;;  %v161_v53 = vld [vmem:[%s555_s5 + $0x20] sm:$0xff]  ;;  %v162_v54 = vld [vmem:[%s555_s5 + $0x28] sm:$0xff] }
   0xc   :  { %v164_v52 = vld [vmem:[%s555_s5 + $0x38] sm:$0xff] }
   0xd   :  { %337 = vmatmul.msk.f32.gmra.mxu0 %vm48_vm0, %v35_v5 }
   0xe   :  { %103 = vperm.xlu1 %362, %v89_v10   ;;  %93 = vperm.xlu2 %363, %v87_v24  }
  0x12   :  { %210 = vperm.xlu0 %361, %v172_v6  }
  0x16   :  { %205 = vperm.xlu1 %362, %v171_v11   ;;  %200 = vperm.xlu2 %363, %v170_v26  }
  0x1a   :  { %195 = vperm.xlu0 %361, %v169_v7  }
  0x1e   :  { %190 = vperm.xlu1 %362, %v168_v14   ;;  %185 = vperm.xlu2 %363, %v167_v28  }
  0x22   :  { %180 = vperm.xlu0 %361, %v166_v8  }
  0x26   :  { %175 = vperm.xlu1 %362, %v165_v20   ;;  %291 = vperm.xlu2 %363, %v288_v30  }
  0x60   :  { %v99_v35 = vpop.permute.xlu2 %98 }
  0x68   :  { %v94_v42 = vpop.permute.xlu2 %93 }
  0x70   :  { %v201_v2 = vpop.permute.xlu2 %200 }
  0x74   :  { %v46_v12 = vpop.permute.xlu0 %45 }
  0x78   :  { %v109_v33 = vpop.permute.xlu1 %108  ;;  %v186_v11 = vpop.permute.xlu2 %185 }
  0x7c   :  { %v41_v15 = vpop.permute.xlu0 %40 }
  0x80   :  { %v104_v36 = vpop.permute.xlu1 %103  ;;  %v292_v24 = vpop.permute.xlu2 %291 }
  0x82   :  { %v75_v13 = vpop.f32.mrf.mxu0 }
  0x83   :  { %v76_v18 = vadd.f32 %v75_v13, %v41_v15 }
  0x84   :  { %v211_v57 = vpop.permute.xlu0 %210 }
  0x85   :  { %v81_v22 = vmax.f32 %v76_v18, 0.0 }
  0x88   :  { %v206_v58 = vpop.permute.xlu1 %205 }
  0x8a   :  { %v78_v16 = vpop.f32.mrf.mxu0 }
  0x8b   :  { %v79_v19 = vadd.f32 %v78_v16, %v46_v12 }
  0x8c   :  { %v196_v4 = vpop.permute.xlu0 %195 }
  0x8d   :  { %v82_v21 = vmax.f32 %v79_v19, 0.0 }
  0x8f   :  { %138 = vmatpush.msra.mxu1 %v82_v21 }
  0x90   :  { %v191_v5 = vpop.permute.xlu1 %190 }
  0x91   :  { %139 = vmatpush.msra.mxu1 %v81_v22 }
  0x92   :  { %338 = vmatmul.msk.f32.vlgmr.msra.gmra.mxu1 %vm111_vm1, %v83_v23  ;;  %v287_v23 = vld [vmem:[%s557_s7] sm:$0xff] }
  0x94   :  { %v181_v15 = vpop.permute.xlu0 %180 }
  0x98   :  { %v176_v18 = vpop.permute.xlu1 %175 }
  0x9a   :  { %339 = vmatmul.msk.f32.gmra.mxu1 %vm111_vm1, %v84_v25 }
  0xa2   :  { %340 = vmatmul.msk.f32.gmra.mxu1 %vm111_vm1, %v85_v27 }
  0xaa   :  { %341 = vmatmul.msk.f32.gmra.mxu1 %vm111_vm1, %v86_v29 }
 0x10f   :  { %v141_v31 = vpop.f32.mrf.mxu1 }
 0x110   :  { %v142_v43 = vadd.f32 %v141_v31, %v94_v42 }
 0x112   :  { %v153_v46 = vmax.f32 %v142_v43, 0.0 }
 0x117   :  { %v144_v32 = vpop.f32.mrf.mxu1 }
 0x118   :  { %v145_v40 = vadd.f32 %v144_v32, %v99_v35 }
 0x11a   :  { %v154_v45 = vmax.f32 %v145_v40, 0.0 }
 0x11f   :  { %v147_v34 = vpop.f32.mrf.mxu1 }
 0x120   :  { %v148_v38 = vadd.f32 %v147_v34, %v104_v36 }
 0x122   :  { %v155_v44 = vmax.f32 %v148_v38, 0.0 }
 0x127   :  { %v150_v37 = vpop.f32.mrf.mxu1 }
 0x128   :  { %v151_v39 = vadd.f32 %v150_v37, %v109_v33 }
 0x12a   :  { %v156_v41 = vmax.f32 %v151_v39, 0.0 }
 0x12c   :  { %250 = vmatpush.msrb.mxu0 %v156_v41  ;;  %351 = vmatpush.msra.mxu2 %v156_v41 }
 0x12d   :  { %352 = vmatpush.msra.mxu3 %v156_v41 }
 0x12e   :  { %251 = vmatpush.msrb.mxu0 %v155_v44  ;;  %353 = vmatpush.msra.mxu2 %v155_v44 }
 0x12f   :  { %354 = vmatpush.msra.mxu3 %v155_v44 }
 0x130   :  { %252 = vmatpush.msrb.mxu0 %v154_v45  ;;  %355 = vmatpush.msra.mxu2 %v154_v45 }
 0x131   :  { %356 = vmatpush.msra.mxu3 %v154_v45 }
 0x132   :  { %253 = vmatpush.msrb.mxu0 %v153_v46  ;;  %357 = vmatpush.msra.mxu2 %v153_v46 }
 0x133   :  { %358 = vmatpush.msra.mxu3 %v153_v46  ;;  %342 = vmatmul.msk.f32.vlgmr.msrb.gmra.mxu0 %vm213_vm2, %v157_v47 }
 0x134   :  { %344 = vmatmul.msk.f32.vlgmr.msra.gmra.mxu2 %vm213_vm2, %v159_v48  ;;  %348 = vmatmul.msk.f32.vlgmr.msra.gmra.mxu3 %vm213_vm2, %v163_v49 }
 0x13b   :  { %343 = vmatmul.msk.f32.gmra.mxu0 %vm213_vm2, %v158_v50 }
 0x13c   :  { %345 = vmatmul.msk.f32.gmra.mxu2 %vm213_vm2, %v160_v51  ;;  %349 = vmatmul.msk.f32.gmra.mxu3 %vm213_vm2, %v164_v52 }
 0x144   :  { %346 = vmatmul.msk.f32.gmra.mxu2 %vm213_vm2, %v161_v53 }
 0x14c   :  { %347 = vmatmul.msk.f32.gmra.mxu2 %vm213_vm2, %v162_v54 }
 0x1b0   :  { %v255_v3 = vpop.f32.mrf.mxu0 }
 0x1b1   :  { %v256_v19 = vadd.f32 %v255_v3, %v176_v18 }
 0x1b3   :  { %v279_v22 = vmax.f32 %v256_v19, 0.0 }
 0x1b7   :  { %v261_v55 = vpop.f32.mrf.mxu2  ;;  %v273_v56 = vpop.f32.mrf.mxu3 }
 0x1b8   :  { %v274_v61 = vadd.f32 %v273_v56, %v206_v58  ;;  %v258_v12 = vpop.f32.mrf.mxu0  ;;  %v262_v13 = vadd.f32 %v261_v55, %v186_v11 }
 0x1b9   :  { %v259_v16 = vadd.f32 %v258_v12, %v181_v15 }
 0x1ba   :  { %v285_v0 = vmax.f32 %v274_v61, 0.0  ;;  %v281_v20 = vmax.f32 %v262_v13, 0.0 }
 0x1bb   :  { %v280_v21 = vmax.f32 %v259_v16, 0.0 }
 0x1bf   :  { %v264_v59 = vpop.f32.mrf.mxu2  ;;  %v276_v60 = vpop.f32.mrf.mxu3 }
 0x1c0   :  { %v277_v62 = vadd.f32 %v276_v60, %v211_v57  ;;  %v265_v9 = vadd.f32 %v264_v59, %v191_v5 }
 0x1c2   :  { %v286_v63 = vmax.f32 %v277_v62, 0.0  ;;  %v282_v17 = vmax.f32 %v265_v9, 0.0 }
 0x1c4   :  { %306 = vmatpush.msrb.mxu3 %v286_v63 }
 0x1c6   :  { %307 = vmatpush.msrb.mxu3 %v285_v0 }
 0x1c7   :  { %v267_v1 = vpop.f32.mrf.mxu2 }
 0x1c8   :  { %v268_v7 = vadd.f32 %v267_v1, %v196_v4 }
 0x1ca   :  { %v283_v14 = vmax.f32 %v268_v7, 0.0 }
 0x1cf   :  { %v270_v6 = vpop.f32.mrf.mxu2 }
 0x1d0   :  { %v271_v8 = vadd.f32 %v270_v6, %v201_v2 }
 0x1d2   :  { %v284_v10 = vmax.f32 %v271_v8, 0.0 }
 0x1d4   :  { %308 = vmatpush.msrb.mxu3 %v284_v10 }
 0x1d6   :  { %309 = vmatpush.msrb.mxu3 %v283_v14 }
 0x1d8   :  { %310 = vmatpush.msrb.mxu3 %v282_v17 }
 0x1da   :  { %311 = vmatpush.msrb.mxu3 %v281_v20 }
 0x1dc   :  { %312 = vmatpush.msrb.mxu3 %v280_v21 }
 0x1de   :  { %313 = vmatpush.msrb.mxu3 %v279_v22 }
 0x1df   :  { %350 = vmatmul.msk.f32.vlgmr.msrb.gmra.mxu3 %vm294_vm3, %v287_v23 }
 0x262   :  { %v315_v25 = vpop.f32.mrf.mxu3 }
 0x263   :  { %v316_v26 = vadd.f32 %v315_v25, %v292_v24 }
 0x265   :  { %318 = vst.msk [vmem:[#allocation2] sm:$0xff] %vm48_vm0, %v316_v26 }
 0x266   :  { %329 = dma.vmem_to_hbm [thread:$0]  %s325_s18, 128, %s327_s21, [#allocation3]  }
 0x267   :  { %388 = dma.done.wait [#allocation3], 128  }
 0x268   :  { %389 = vsyncadd [#allocation3], 4294967168 }
 0x269   :  { %334 = vsyncpa [#allocation3], 1 }

</bundles_post_ra>
